<compile_context>
chip_gen: v7x
topology: tpu7x:2x2x1
jax: 0.10.0
libtpu: 0.0.40
codegen_flags: <defaults>
</compile_context>

<pallas_src>
import functools

import numpy as np
import jax
import jax.numpy as jnp
from jax.experimental import pallas as pl
from jax.experimental.pallas import tpu as pltpu


def _round_up(x, m):
    return (x + m - 1) // m * m


def _reflect_stride_indices(size: int, p: int, s: int) -> jnp.ndarray:
    """Source indices produced by reflect-pad(p) followed by ::s sampling.

    Matches PyTorch padding_mode='reflect' (no edge repeat); requires p < size.
    """
    pos = np.arange(0, size + 2 * p, s) - p                     # coords in unpadded frame
    pos = np.abs(pos)                                           # reflect about 0
    pos = np.where(pos >= size, 2 * (size - 1) - pos, pos)      # reflect about size-1
    return jnp.asarray(pos, dtype=jnp.int32)


def _conv1x1_matmul_kernel(x_ref, w_ref, o_ref):
    # x_ref: (TILE_M, inc)  pixel rows, channels last
    # w_ref: (inc, outc)    resident channel-mixing weight
    # o_ref: (TILE_M, outc)
    o_ref[...] = jnp.dot(
        x_ref[...], w_ref[...], preferred_element_type=jnp.float32
    ).astype(o_ref.dtype)


@functools.partial(jax.jit, static_argnames=("p", "s", "compute_dtype", "tile_m"))
def trans_block_forward(x_nchw, weight_oi, p: int, s: int,
                        compute_dtype=jnp.float32, tile_m: int = 1024):
    """Equivalent of TransBlock.forward.

    x_nchw:    (N, inc, H, W)   float32
    weight_oi: (outc, inc)      float32  (the (outc, inc, 1, 1) conv weight squeezed)
    """
    n, inc, h, w = x_nchw.shape
    outc = weight_oi.shape[0]

    # --- glue: reflect-pad + stride sampling as a single static gather ---
    idx_h = _reflect_stride_indices(h, p, s)
    idx_w = _reflect_stride_indices(w, p, s)
    oh, ow = idx_h.shape[0], idx_w.shape[0]
    x_samp = x_nchw[:, :, idx_h[:, None], idx_w[None, :]]       # (N, inc, OH, OW)

    # single layout copy: NCHW -> NHWC rows, channels on lanes
    x_rows = jnp.transpose(x_samp, (0, 2, 3, 1)).reshape(n * oh * ow, inc)
    x_rows = x_rows.astype(compute_dtype)
    w_mat = jnp.transpose(weight_oi, (1, 0)).astype(compute_dtype)   # (inc, outc)

    m = x_rows.shape[0]
    # Row tile: large enough to pipeline well, small enough for VMEM everywhere.
    tm = min(tile_m, _round_up(m, 8))
    grid = (pl.cdiv(m, tm),)

    in_bytes = jnp.dtype(compute_dtype).itemsize
    cost = pl.CostEstimate(
        flops=2 * m * inc * outc,
        transcendentals=0,
        bytes_accessed=m * inc * in_bytes + inc * outc * in_bytes + m * outc * 4,
    )

    out_rows = pl.pallas_call(
        _conv1x1_matmul_kernel,
        out_shape=jax.ShapeDtypeStruct((m, outc), jnp.float32),
        grid=grid,
        in_specs=[
            pl.BlockSpec((tm, inc), lambda i: (i, 0)),    # pipelined row tiles
            pl.BlockSpec((inc, outc), lambda i: (0, 0)),  # weight resident across grid
        ],
        out_specs=pl.BlockSpec((tm, outc), lambda i: (i, 0)),
        compiler_params=pltpu.CompilerParams(
            dimension_semantics=("parallel",),            # v7x: shard rows over 2 TCs
        ),
        cost_estimate=cost,
    )(x_rows, w_mat)

    # --- glue: rows -> NHWC -> NCHW ---
    out_nhwc = out_rows.reshape(n, oh, ow, outc)
    return jnp.transpose(out_nhwc, (0, 3, 1, 2))          # (N, outc, OH, OW)


if __name__ == "__main__":
    # Small deterministic example: TransBlock(inc=4, outc=8, p=1, s=2)
    inc, outc, p, s = 4, 8, 1, 2
    N, H, W = 2, 16, 16

    key = jax.random.PRNGKey(0)
    kx, kw = jax.random.split(key)
    x = jax.random.normal(kx, (N, inc, H, W), dtype=jnp.float32)
    # Conv2d weight shape is (outc, inc, 1, 1); store the squeezed (outc, inc).
    bound = 1.0 / (inc ** 0.5)  # mimic PyTorch default init bound for k=1
    weight = jax.random.uniform(
        kw, (outc, inc), minval=-bound, maxval=bound, dtype=jnp.float32
    )

    # Plain-JAX reference of the same math (independent path: jnp.pad reflect).
    x_pad = jnp.pad(x, ((0, 0), (0, 0), (p, p), (p, p)), mode="reflect")
    ref = jnp.einsum("nchw,oc->nohw", x_pad[:, :, ::s, ::s], weight)

    # f32 path (matches PyTorch module semantics).
    out = jax.block_until_ready(trans_block_forward(x, weight, p, s))
    assert out.shape == ref.shape, (out.shape, ref.shape)
    assert jnp.allclose(out, ref, atol=2e-4, rtol=2e-4)

    # bf16-input path (halves HBM read bytes; f32 accumulation on the MXU).
    out_bf16 = jax.block_until_ready(
        trans_block_forward(x, weight, p, s, compute_dtype=jnp.bfloat16)
    )
    assert jnp.allclose(out_bf16, ref, atol=5e-2, rtol=5e-2)

    print("KERNEL_OK")
</pallas_src>

<mosaic_0001>
module attributes {stable_mosaic.version = 11 : i64} {
  func.func @_conv1x1_matmul_kernel(%arg0: i32, %arg1: memref<168x4xf32, #tpu.memory_space<vmem>>, %arg2: memref<4x8xf32, #tpu.memory_space<vmem>>, %arg3: memref<168x8xf32, #tpu.memory_space<vmem>>) attributes {dimension_semantics = [#tpu.dimension_semantics<parallel>], iteration_bounds = array<i64: 1>, scalar_prefetch = 0 : i64, scratch_operands = 0 : i64, tpu.core_type = #tpu.core_type<tc>, window_params = [{transform_indices = @transform_0, window_bounds = array<i64: 168, 4>}, {pipeline_mode = #tpu.pipeline_mode<synchronous>, transform_indices = @transform_1, window_bounds = array<i64: 4, 8>}, {transform_indices = @transform_2, window_bounds = array<i64: 168, 8>}]} {
    %c0 = arith.constant 0 : index
    %c0_0 = arith.constant 0 : index
    %0 = vector.load %arg1[%c0, %c0_0] : memref<168x4xf32, #tpu.memory_space<vmem>>, vector<168x4xf32>
    %c0_1 = arith.constant 0 : index
    %c0_2 = arith.constant 0 : index
    %1 = vector.load %arg2[%c0_1, %c0_2] : memref<4x8xf32, #tpu.memory_space<vmem>>, vector<4x8xf32>
    %cst = arith.constant dense<0.000000e+00> : vector<168x8xf32>
    %2 = tpu.matmul %0, %1, %cst {dimension_numbers = #tpu.dot_dimension_numbers<[1], [0], [0], [1], [0, 0, 1, 1], [], []>} : vector<168x4xf32>, vector<4x8xf32>, vector<168x8xf32> -> vector<168x8xf32>
    %c0_3 = arith.constant 0 : index
    %c0_4 = arith.constant 0 : index
    %3 = vector.load %arg3[%c0_3, %c0_4] : memref<168x8xf32, #tpu.memory_space<vmem>>, vector<168x8xf32>
    tpu.vector_store %arg3[%c0_3, %c0_4], %2 {strides = array<i32>} : memref<168x8xf32, #tpu.memory_space<vmem>>, vector<168x8xf32>,
    return
  }
  func.func @transform_0(%arg0: i32) -> (i32, i32) {
    %c0_i32 = arith.constant 0 : i32
    %c0_i32_0 = arith.constant 0 : i32
    return %arg0, %c0_i32 : i32, i32
  }
  func.func @transform_1(%arg0: i32) -> (i32, i32) {
    %c0_i32 = arith.constant 0 : i32
    %c0_i32_0 = arith.constant 0 : i32
    %c0_i32_1 = arith.constant 0 : i32
    return %c0_i32, %c0_i32_0 : i32, i32
  }
  func.func @transform_2(%arg0: i32) -> (i32, i32) {
    %c0_i32 = arith.constant 0 : i32
    %c0_i32_0 = arith.constant 0 : i32
    return %arg0, %c0_i32 : i32, i32
  }
}

</mosaic_0001>

<bundles_post_ra>
// kernel: trans_block_forward.1
= control target key start
LH: loop header
LB: loop body
LE: loop exit
PB: predicated region body
PF: predicated region fallthrough
CT: control target
= control target key end

     0   :  { %vm97_vm0 = vcmask 1043456   ;;  %vm33_vm1 = vcmask 31744   ;;  %v410_v0 = vmov 0.0   ;;  %vm411_vm2 = vmmov 0   ;;  %s642_s1 = inlined_call_operand.vmem [shape: f32[4,8], index: 1, kind: input, shape index: {}]   ;;  %s643_s0 = inlined_call_operand.vmem [shape: f32[162,4], index: 0, kind: input, shape index: {}]   ;;  %s644_s2 = inlined_call_operand.vmem [shape: f32[162,8], index: 2, kind: output, shape index: {}]  }
   0x1   :  { %341 = vmatprep.subr.mxu0 %v410_v0  ;;  %v32_v1 = vld [vmem:[%s642_s1] sm:$0xf]  ;;  %343 = vmatprep.mubr.msk.f32.mxu0 %vm411_vm2, %v410_v0  ;;  %v22_v3 = vld [vmem:[%s643_s0 + $0x58] sm:$0xff]  ;;  %v12_v4 = vld [vmem:[%s643_s0 + $0x8] sm:$0xff]  ;;  %vm271_vm3 = vcmask 64512  }
   0x2   :  { %v11_v2 = vld [vmem:[%s643_s0] sm:$0xff]  ;;  %342 = vmatpush3.msk.msra.mxu0 %vm97_vm0, %v32_v1  ;;  %406 = vmatprep.subr.mxu1 %v410_v0  ;;  %v13_v6 = vld [vmem:[%s643_s0 + $0x10] sm:$0xff]  ;;  %v24_v7 = vld [vmem:[%s643_s0 + $0x68] sm:$0xff] }
   0x3   :  { %344 = vmatmul.mubr.msk.f32.vlgmr.msra.gmra.mrb[0].mxu0 %vm33_vm1, %v11_v2  ;;  %407 = vmatpush3.msk.msra.mxu1 %vm97_vm0, %v32_v1  ;;  %v23_v5 = vld [vmem:[%s643_s0 + $0x60] sm:$0xff]  ;;  %v14_v8 = vld [vmem:[%s643_s0 + $0x18] sm:$0xff]  ;;  %v25_v9 = vld [vmem:[%s643_s0 + $0x70] sm:$0xff] }
   0x4   :  { %376 = vmatprep.mubr.msk.f32.mxu1 %vm411_vm2, %v410_v0  ;;  %346 = vmatprep.mubr.msk.f32.mxu0 %vm411_vm2, %v410_v0  ;;  %v15_v10 = vld [vmem:[%s643_s0 + $0x20] sm:$0xff]  ;;  %v26_v11 = vld [vmem:[%s643_s0 + $0x78] sm:$0xff]  ;;  %v16_v12 = vld [vmem:[%s643_s0 + $0x28] sm:$0xff] }
   0x5   :  { %377 = vmatmul.mubr.msk.f32.vlgmr.msra.gmra.mrb[0].mxu1 %vm33_vm1, %v22_v3  ;;  %v27_v13 = vld [vmem:[%s643_s0 + $0x80] sm:$0xff]  ;;  %v17_v14 = vld [vmem:[%s643_s0 + $0x30] sm:$0xff]  ;;  %v28_v15 = vld [vmem:[%s643_s0 + $0x88] sm:$0xff] }
   0x6   :  { %379 = vmatprep.mubr.msk.f32.mxu1 %vm411_vm2, %v410_v0  ;;  %v18_v16 = vld [vmem:[%s643_s0 + $0x38] sm:$0xff]  ;;  %v29_v17 = vld [vmem:[%s643_s0 + $0x90] sm:$0xff]  ;;  %v19_v18 = vld [vmem:[%s643_s0 + $0x40] sm:$0xff] }
   0x7   :  { %347 = vmatmul.mubr.msk.f32.gmra.mrb[2].mxu0 %vm33_vm1, %v12_v4  ;;  %v30_v19 = vld [vmem:[%s643_s0 + $0x98] sm:$0xff]  ;;  %v20_v20 = vld [vmem:[%s643_s0 + $0x48] sm:$0xff]  ;;  %v31_v21 = vld [vmem:[%s643_s0 + $0xa0] sm:$0xff] }
   0x8   :  { %349 = vmatprep.mubr.msk.f32.mxu0 %vm411_vm2, %v410_v0  ;;  %v21_v22 = vld [vmem:[%s643_s0 + $0x50] sm:$0xff] }
   0x9   :  { %380 = vmatmul.mubr.msk.f32.gmra.mrb[2].mxu1 %vm33_vm1, %v23_v5 }
   0xa   :  { %382 = vmatprep.mubr.msk.f32.mxu1 %vm411_vm2, %v410_v0 }
   0xb   :  { %350 = vmatmul.mubr.msk.f32.gmra.mrb[4].mxu0 %vm33_vm1, %v13_v6 }
   0xc   :  { %352 = vmatprep.mubr.msk.f32.mxu0 %vm411_vm2, %v410_v0 }
   0xd   :  { %383 = vmatmul.mubr.msk.f32.gmra.mrb[4].mxu1 %vm33_vm1, %v24_v7 }
   0xe   :  { %385 = vmatprep.mubr.msk.f32.mxu1 %vm411_vm2, %v410_v0 }
   0xf   :  { %353 = vmatmul.mubr.msk.f32.gmra.mrb[6].mxu0 %vm33_vm1, %v14_v8 }
  0x10   :  { %355 = vmatprep.mubr.msk.f32.mxu0 %vm411_vm2, %v410_v0 }
  0x11   :  { %386 = vmatmul.mubr.msk.f32.gmra.mrb[6].mxu1 %vm33_vm1, %v25_v9 }
  0x12   :  { %388 = vmatprep.mubr.msk.f32.mxu1 %vm411_vm2, %v410_v0 }
  0x13   :  { %356 = vmatmul.mubr.msk.f32.gmra.mrb[8].mxu0 %vm33_vm1, %v15_v10 }
  0x14   :  { %358 = vmatprep.mubr.msk.f32.mxu0 %vm411_vm2, %v410_v0 }
  0x15   :  { %389 = vmatmul.mubr.msk.f32.gmra.mrb[8].mxu1 %vm33_vm1, %v26_v11 }
  0x16   :  { %391 = vmatprep.mubr.msk.f32.mxu1 %vm411_vm2, %v410_v0 }
  0x17   :  { %359 = vmatmul.mubr.msk.f32.gmra.mrb[10].mxu0 %vm33_vm1, %v16_v12 }
  0x18   :  { %361 = vmatprep.mubr.msk.f32.mxu0 %vm411_vm2, %v410_v0 }
  0x19   :  { %392 = vmatmul.mubr.msk.f32.gmra.mrb[10].mxu1 %vm33_vm1, %v27_v13 }
  0x1a   :  { %394 = vmatprep.mubr.msk.f32.mxu1 %vm411_vm2, %v410_v0 }
  0x1b   :  { %362 = vmatmul.mubr.msk.f32.gmra.mrb[12].mxu0 %vm33_vm1, %v17_v14 }
  0x1c   :  { %364 = vmatprep.mubr.msk.f32.mxu0 %vm411_vm2, %v410_v0 }
  0x1d   :  { %395 = vmatmul.mubr.msk.f32.gmra.mrb[12].mxu1 %vm33_vm1, %v28_v15 }
  0x1e   :  { %397 = vmatprep.mubr.msk.f32.mxu1 %vm411_vm2, %v410_v0 }
  0x1f   :  { %365 = vmatmul.mubr.msk.f32.gmra.mrb[14].mxu0 %vm33_vm1, %v18_v16 }
  0x20   :  { %367 = vmatprep.mubr.msk.f32.mxu0 %vm411_vm2, %v410_v0 }
  0x21   :  { %398 = vmatmul.mubr.msk.f32.gmra.mrb[14].mxu1 %vm33_vm1, %v29_v17 }
  0x22   :  { %400 = vmatprep.mubr.msk.f32.mxu1 %vm411_vm2, %v410_v0 }
  0x23   :  { %368 = vmatmul.mubr.msk.f32.gmra.mrb[16].mxu0 %vm33_vm1, %v19_v18 }
  0x24   :  { %370 = vmatprep.mubr.msk.f32.mxu0 %vm411_vm2, %v410_v0 }
  0x25   :  { %401 = vmatmul.mubr.msk.f32.gmra.mrb[16].mxu1 %vm33_vm1, %v30_v19 }
  0x26   :  { %403 = vmatprep.mubr.msk.f32.mxu1 %vm411_vm2, %v410_v0 }
  0x27   :  { %371 = vmatmul.mubr.msk.f32.gmra.mrb[18].mxu0 %vm33_vm1, %v20_v20 }
  0x28   :  { %373 = vmatprep.mubr.msk.f32.mxu0 %vm411_vm2, %v410_v0 }
  0x29   :  { %404 = vmatmul.mubr.msk.f32.gmra.mrb[18].mxu1 %vm33_vm1, %v31_v21 }
  0x2b   :  { %374 = vmatmul.mubr.msk.f32.gmra.mrb[20].mxu0 %vm33_vm1, %v21_v22 }
  0xd6   :  { %v167_v23 = vpop.f32.mrb[0].mxu0 }
  0xd7   :  { %272 = vst.msk [vmem:[%s644_s2] sm:$0xff] %vm271_vm3, %v167_v23  ;;  %v345_v24 = vpop.f32.mrb[1].mxu0 }
  0xd8   :  { %v222_v25 = vpop.f32.mrb[0].mxu1 }
  0xd9   :  { %283 = vst.msk [vmem:[%s644_s2 + $0x58] sm:$0xff] %vm271_vm3, %v222_v25  ;;  %v378_v26 = vpop.f32.mrb[1].mxu1 }
  0xda   :  { %v172_v27 = vpop.f32.mrb[2].mxu0 }
  0xdb   :  { %273 = vst.msk [vmem:[%s644_s2 + $0x8] sm:$0xff] %vm271_vm3, %v172_v27  ;;  %v348_v28 = vpop.f32.mrb[3].mxu0 }
  0xdc   :  { %v227_v29 = vpop.f32.mrb[2].mxu1 }
  0xdd   :  { %284 = vst.msk [vmem:[%s644_s2 + $0x60] sm:$0xff] %vm271_vm3, %v227_v29  ;;  %v381_v30 = vpop.f32.mrb[3].mxu1 }
  0xde   :  { %v177_v31 = vpop.f32.mrb[4].mxu0 }
  0xdf   :  { %274 = vst.msk [vmem:[%s644_s2 + $0x10] sm:$0xff] %vm271_vm3, %v177_v31  ;;  %v351_v32 = vpop.f32.mrb[5].mxu0 }
  0xe0   :  { %v232_v33 = vpop.f32.mrb[4].mxu1 }
  0xe1   :  { %285 = vst.msk [vmem:[%s644_s2 + $0x68] sm:$0xff] %vm271_vm3, %v232_v33  ;;  %v384_v34 = vpop.f32.mrb[5].mxu1 }
  0xe2   :  { %v182_v35 = vpop.f32.mrb[6].mxu0 }
  0xe3   :  { %275 = vst.msk [vmem:[%s644_s2 + $0x18] sm:$0xff] %vm271_vm3, %v182_v35  ;;  %v354_v36 = vpop.f32.mrb[7].mxu0 }
  0xe4   :  { %v237_v37 = vpop.f32.mrb[6].mxu1 }
  0xe5   :  { %286 = vst.msk [vmem:[%s644_s2 + $0x70] sm:$0xff] %vm271_vm3, %v237_v37  ;;  %v387_v38 = vpop.f32.mrb[7].mxu1 }
  0xe6   :  { %v187_v39 = vpop.f32.mrb[8].mxu0 }
  0xe7   :  { %276 = vst.msk [vmem:[%s644_s2 + $0x20] sm:$0xff] %vm271_vm3, %v187_v39  ;;  %v357_v40 = vpop.f32.mrb[9].mxu0 }
  0xe8   :  { %v242_v41 = vpop.f32.mrb[8].mxu1 }
  0xe9   :  { %287 = vst.msk [vmem:[%s644_s2 + $0x78] sm:$0xff] %vm271_vm3, %v242_v41  ;;  %v390_v42 = vpop.f32.mrb[9].mxu1 }
  0xea   :  { %v192_v43 = vpop.f32.mrb[10].mxu0 }
  0xeb   :  { %277 = vst.msk [vmem:[%s644_s2 + $0x28] sm:$0xff] %vm271_vm3, %v192_v43  ;;  %v360_v44 = vpop.f32.mrb[11].mxu0 }
  0xec   :  { %v247_v45 = vpop.f32.mrb[10].mxu1 }
  0xed   :  { %288 = vst.msk [vmem:[%s644_s2 + $0x80] sm:$0xff] %vm271_vm3, %v247_v45  ;;  %v393_v46 = vpop.f32.mrb[11].mxu1 }
  0xee   :  { %v197_v47 = vpop.f32.mrb[12].mxu0 }
  0xef   :  { %278 = vst.msk [vmem:[%s644_s2 + $0x30] sm:$0xff] %vm271_vm3, %v197_v47  ;;  %v363_v48 = vpop.f32.mrb[13].mxu0 }
  0xf0   :  { %v252_v49 = vpop.f32.mrb[12].mxu1 }
  0xf1   :  { %289 = vst.msk [vmem:[%s644_s2 + $0x88] sm:$0xff] %vm271_vm3, %v252_v49  ;;  %v396_v50 = vpop.f32.mrb[13].mxu1 }
  0xf2   :  { %v202_v51 = vpop.f32.mrb[14].mxu0 }
  0xf3   :  { %279 = vst.msk [vmem:[%s644_s2 + $0x38] sm:$0xff] %vm271_vm3, %v202_v51  ;;  %v366_v52 = vpop.f32.mrb[15].mxu0 }
  0xf4   :  { %v257_v53 = vpop.f32.mrb[14].mxu1 }
  0xf5   :  { %290 = vst.msk [vmem:[%s644_s2 + $0x90] sm:$0xff] %vm271_vm3, %v257_v53  ;;  %v399_v54 = vpop.f32.mrb[15].mxu1 }
  0xf6   :  { %v207_v55 = vpop.f32.mrb[16].mxu0 }
  0xf7   :  { %280 = vst.msk [vmem:[%s644_s2 + $0x40] sm:$0xff] %vm271_vm3, %v207_v55  ;;  %v369_v56 = vpop.f32.mrb[17].mxu0 }
  0xf8   :  { %v262_v57 = vpop.f32.mrb[16].mxu1 }
  0xf9   :  { %291 = vst.msk [vmem:[%s644_s2 + $0x98] sm:$0xff] %vm271_vm3, %v262_v57  ;;  %v402_v58 = vpop.f32.mrb[17].mxu1 }
  0xfa   :  { %v212_v59 = vpop.f32.mrb[18].mxu0 }
  0xfb   :  { %281 = vst.msk [vmem:[%s644_s2 + $0x48] sm:$0xff] %vm271_vm3, %v212_v59  ;;  %v372_v60 = vpop.f32.mrb[19].mxu0 }
  0xfc   :  { %v267_v61 = vpop.f32.mrb[18].mxu1 }
  0xfd   :  { %292 = vst.msk [vmem:[%s644_s2 + $0xa0] sm:$0xff] %vm271_vm3, %v267_v61  ;;  %v405_v62 = vpop.f32.mrb[19].mxu1 }
  0xfe   :  { %v217_v63 = vpop.f32.mrb[20].mxu0 }
  0xff   :  { %282 = vst.msk [vmem:[%s644_s2 + $0x50] sm:$0xff] %vm271_vm3, %v217_v63  ;;  %v375_v0 = vpop.f32.mrb[21].mxu0 }

</bundles_post_ra>
